<compile_context>
chip_gen: v5e
topology: v5e:2x2
jax: 0.10.0
libtpu: 0.0.40
codegen_flags: <defaults>
</compile_context>

<pallas_src>
import math
import jax
import jax.numpy as jnp
from jax.experimental import pallas as pl
from jax.experimental.pallas import tpu as pltpu


def _round_up(n, m):
    return ((n + m - 1) // m) * m


def _tail(pre_act, w1_ref, b1_ref, w2_ref, b2_ref, wh_ref, bh_ref):
    """features-ReLU -> l1 -> ReLU -> l2 -> head, all on VMEM-resident weights."""
    h = jnp.maximum(pre_act, 0.0)                                   # relu(x@w0+b0)
    h = jnp.dot(h.astype(jnp.bfloat16), w1_ref[...],
                preferred_element_type=jnp.float32) + b1_ref[...]   # l1
    h = jnp.maximum(h, 0.0)
    h = jnp.dot(h.astype(jnp.bfloat16), w2_ref[...],
                preferred_element_type=jnp.float32) + b2_ref[...]   # l2
    out = jnp.dot(h.astype(jnp.bfloat16), wh_ref[...],
                  preferred_element_type=jnp.float32) + bh_ref[...]  # head
    return out, h


def _make_kernel(multi_k, with_features):
    def kernel(x_ref, w0_ref, b0_ref, w1_ref, b1_ref, w2_ref, b2_ref,
               wh_ref, bh_ref, *rest):
        n_out = 2 if with_features else 1
        out_ref = rest[0]
        h_ref = rest[1] if with_features else None
        scratch = rest[n_out:]

        def finalize(acc):
            out, h = _tail(acc + b0_ref[...],
                           w1_ref, b1_ref, w2_ref, b2_ref, wh_ref, bh_ref)
            out_ref[...] = out.astype(out_ref.dtype)
            if with_features:
                h_ref[...] = h.astype(h_ref.dtype)

        if multi_k:
            acc_ref, = scratch
            k = pl.program_id(1)

            @pl.when(k == 0)
            def _init():
                acc_ref[...] = jnp.zeros_like(acc_ref)

            # Streaming K-reduction of the dominant GEMM; x cast to bf16
            # in-kernel (VALU has slack in a mem-bound loop).
            acc_ref[...] += jnp.dot(x_ref[...].astype(jnp.bfloat16), w0_ref[...],
                                    preferred_element_type=jnp.float32)

            @pl.when(k == pl.num_programs(1) - 1)
            def _fin():
                finalize(acc_ref[...])
        else:
            # Fast path: whole K fits in one block; no scratch / no pl.when.
            acc = jnp.dot(x_ref[...].astype(jnp.bfloat16), w0_ref[...],
                          preferred_element_type=jnp.float32)
            finalize(acc)

    return kernel


def pack_params(params, *, tk_cap=2048, tk_align=256):
    """One-time pad + cast of weights to kernel layout (hoisted out of forward)."""
    d_in, repres_dim = params["w0"].shape
    hidden_dim = params["w1"].shape[1]
    proj_dim = params["w2"].shape[1]
    n_class = params["wh"].shape[1]

    tk = min(tk_cap, _round_up(d_in, tk_align))   # multiple of 256 (v6e/v7x MXU)
    K_pad = _round_up(d_in, tk)
    R_pad = _round_up(repres_dim, 128)
    H_pad = _round_up(hidden_dim, 128)
    P_pad = _round_up(proj_dim, 128)
    C_pad = _round_up(n_class, 128)

    def pad2(a, rows, cols, dtype):
        a = jnp.asarray(a, dtype)
        return jnp.pad(a, ((0, rows - a.shape[0]), (0, cols - a.shape[1])))

    packed = dict(
        w0=pad2(params["w0"], K_pad, R_pad, jnp.bfloat16),
        b0=pad2(params["b0"], 1, R_pad, jnp.float32),
        w1=pad2(params["w1"], R_pad, H_pad, jnp.bfloat16),
        b1=pad2(params["b1"], 1, H_pad, jnp.float32),
        w2=pad2(params["w2"], H_pad, P_pad, jnp.bfloat16),
        b2=pad2(params["b2"], 1, P_pad, jnp.float32),
        wh=pad2(params["wh"], P_pad, C_pad, jnp.bfloat16),
        bh=pad2(params["bh"], 1, C_pad, jnp.float32),
    )
    meta = dict(d_in=d_in, repres_dim=repres_dim, hidden_dim=hidden_dim,
                proj_dim=proj_dim, n_class=n_class, tk=tk, K_pad=K_pad,
                R_pad=R_pad, H_pad=H_pad, P_pad=P_pad, C_pad=C_pad)
    return packed, meta


def contrastive_forward(x, packed, meta, return_features=False, tm=None):
    """Pallas forward matching ContrastiveModelWrapper.forward semantics."""
    B = x.shape[0]
    x_flat = x.reshape(B, -1)                       # glue: NCHW -> [B, C*H*W]
    assert x_flat.shape[1] == meta["d_in"]
    x_flat = x_flat.astype(jnp.float32)             # no-op for f32 producers

    d_in = meta["d_in"]
    tk, K_pad = meta["tk"], meta["K_pad"]
    R_pad, H_pad = meta["R_pad"], meta["H_pad"]
    P_pad, C_pad = meta["P_pad"], meta["C_pad"]
    n_class, proj_dim = meta["n_class"], meta["proj_dim"]

    if tm is None:
        # Cover the whole batch (up to 512 rows) so w0 streams from HBM exactly
        # once per call; multiple of 16 keeps bf16 sublane packing clean.
        tm = min(512, _round_up(B, 16))
    B_pad = _round_up(B, tm)

    # Pad x only when necessary (avoid an extra wrapper-side HBM pass).
    if (B_pad, K_pad) != x_flat.shape:
        x_flat = jnp.pad(x_flat, ((0, B_pad - B), (0, K_pad - d_in)))

    n_b = B_pad // tm
    n_k = K_pad // tk
    multi_k = n_k > 1
    with_features = bool(return_features)

    # VMEM budget computed from the actual footprint (default 2x buffering on
    # every auto-pipelined operand), clamped for headroom on v7x (64 MiB phys).
    resident_bytes = 2 * (R_pad * H_pad + H_pad * P_pad + P_pad * C_pad) * 2 \
                     + 2 * (R_pad + H_pad + P_pad + C_pad) * 4
    streamed_bytes = 2 * (tm * tk * 4 + tk * R_pad * 2)
    out_bytes = 2 * tm * C_pad * 4 + (2 * tm * P_pad * 4 if with_features else 0)
    acc_bytes = tm * R_pad * 4 if multi_k else 0
    footprint = resident_bytes + streamed_bytes + out_bytes + acc_bytes
    vmem_limit = int(min(40 * 2**20, max(16 * 2**20, int(1.5 * footprint))))

    if multi_k:
        grid = (n_b, n_k)
        x_spec = pl.BlockSpec((tm, tk), lambda i, k: (i, k))
        w0_spec = pl.BlockSpec((tk, R_pad), lambda i, k: (k, 0))
        const = lambda i, k: (0, 0)
        out_map = lambda i, k: (i, 0)
        dims = ("parallel", "arbitrary")
        scratch = [pltpu.VMEM((tm, R_pad), jnp.float32)]
    else:
        grid = (n_b,)
        x_spec = pl.BlockSpec((tm, tk), lambda i: (i, 0))
        w0_spec = pl.BlockSpec((tk, R_pad), lambda i: (0, 0))
        const = lambda i: (0, 0)
        out_map = lambda i: (i, 0)
        dims = ("parallel",)
        scratch = []

    in_specs = [
        x_spec,                                   # x tile (f32, cast in-kernel)
        w0_spec,                                  # w0 K-tile (bf16)
        pl.BlockSpec((1, R_pad), const),          # b0
        pl.BlockSpec((R_pad, H_pad), const),      # w1 (VMEM-resident)
        pl.BlockSpec((1, H_pad), const),          # b1
        pl.BlockSpec((H_pad, P_pad), const),      # w2
        pl.BlockSpec((1, P_pad), const),          # b2
        pl.BlockSpec((P_pad, C_pad), const),      # wh
        pl.BlockSpec((1, C_pad), const),          # bh
    ]

    out_specs = [pl.BlockSpec((tm, C_pad), out_map)]
    out_shapes = [jax.ShapeDtypeStruct((B_pad, C_pad), jnp.float32)]
    if with_features:
        out_specs.append(pl.BlockSpec((tm, P_pad), out_map))
        out_shapes.append(jax.ShapeDtypeStruct((B_pad, P_pad), jnp.float32))

    results = pl.pallas_call(
        _make_kernel(multi_k, with_features),
        out_shape=tuple(out_shapes),
        grid_spec=pltpu.PrefetchScalarGridSpec(
            num_scalar_prefetch=0,
            grid=grid,
            in_specs=in_specs,
            out_specs=tuple(out_specs),
            scratch_shapes=scratch,
        ),
        compiler_params=pltpu.CompilerParams(
            dimension_semantics=dims,
            vmem_limit_bytes=vmem_limit,
        ),
    )(x_flat, packed["w0"], packed["b0"], packed["w1"], packed["b1"],
      packed["w2"], packed["b2"], packed["wh"], packed["bh"])

    out = results[0][:B, :n_class]
    if with_features:
        h = results[1][:B, :proj_dim]
        return out, h
    return out


def _linear_init(key, fan_in, fan_out):
    """PyTorch nn.Linear default init: U(-1/sqrt(fan_in), 1/sqrt(fan_in))."""
    kw, kb = jax.random.split(key)
    bound = 1.0 / math.sqrt(fan_in)
    w = jax.random.uniform(kw, (fan_in, fan_out), jnp.float32, -bound, bound)
    b = jax.random.uniform(kb, (1, fan_out), jnp.float32, -bound, bound)
    return w, b


def init_params(key, d_in, repres_dim, proj_dim, n_class):
    k0, k1, k2, kh = jax.random.split(key, 4)
    w0, b0 = _linear_init(k0, d_in, repres_dim)             # base-model feature fc
    w1, b1 = _linear_init(k1, repres_dim, repres_dim // 2)  # self.l1
    w2, b2 = _linear_init(k2, repres_dim // 2, proj_dim)    # self.l2
    wh, bh = _linear_init(kh, proj_dim, n_class)            # self.head
    return dict(w0=w0, b0=b0, w1=w1, b1=b1, w2=w2, b2=b2, wh=wh, bh=bh)


if __name__ == "__main__":
    # Small shapes consistent with the module:
    # x: [B=2, C=4, H=16, W=16], repres_dim=32, proj_dim=16, n_class=10.
    B, C, H, W = 2, 4, 16, 16
    repres_dim, proj_dim, n_class = 32, 16, 10
    d_in = C * H * W

    key = jax.random.PRNGKey(0)
    kx, kp = jax.random.split(key)
    x = jax.random.normal(kx, (B, C, H, W), jnp.float32)
    params = init_params(kp, d_in, repres_dim, proj_dim, n_class)

    # Pure-JAX f32 reference (bf16 weights in the kernel -> looser tolerance).
    xf = x.reshape(B, -1)
    ref_h = jnp.maximum(xf @ params["w0"] + params["b0"], 0.0)
    ref_h = jnp.maximum(ref_h @ params["w1"] + params["b1"], 0.0)
    ref_h = ref_h @ params["w2"] + params["b2"]
    ref_out = ref_h @ params["wh"] + params["bh"]

    # --- fast path (single-K block, the realistic per-call route) ---
    packed, meta = pack_params(params)          # one-time weight pad/cast
    out, h = contrastive_forward(x, packed, meta, return_features=True)
    out = jax.block_until_ready(out)
    h = jax.block_until_ready(h)
    assert out.shape == (B, n_class) and h.shape == (B, proj_dim)
    assert jnp.allclose(out, ref_out, atol=2e-2, rtol=2e-2), \
        float(jnp.max(jnp.abs(out - ref_out)))
    assert jnp.allclose(h, ref_h, atol=2e-2, rtol=2e-2), \
        float(jnp.max(jnp.abs(h - ref_h)))

    # --- return_features=False variant (no h writeback) ---
    out_only = jax.block_until_ready(
        contrastive_forward(x, packed, meta, return_features=False))
    assert out_only.shape == (B, n_class)
    assert jnp.allclose(out_only, ref_out, atol=2e-2, rtol=2e-2)

    # --- streaming-K path exercised with a small forced tk (validation only) ---
    packed_s, meta_s = pack_params(params, tk_cap=256)
    out_s, h_s = contrastive_forward(x, packed_s, meta_s, return_features=True)
    out_s = jax.block_until_ready(out_s)
    h_s = jax.block_until_ready(h_s)
    assert jnp.allclose(out_s, ref_out, atol=2e-2, rtol=2e-2)
    assert jnp.allclose(h_s, ref_h, atol=2e-2, rtol=2e-2)

    print("KERNEL_OK")
</pallas_src>

<mosaic_0001>
module attributes {stable_mosaic.version = 11 : i64} {
  func.func @kernel(%arg0: i32, %arg1: memref<16x1024xf32, #tpu.memory_space<vmem>>, %arg2: memref<1024x128xbf16, #tpu.memory_space<vmem>>, %arg3: memref<1x128xf32, #tpu.memory_space<vmem>>, %arg4: memref<128x128xbf16, #tpu.memory_space<vmem>>, %arg5: memref<1x128xf32, #tpu.memory_space<vmem>>, %arg6: memref<128x128xbf16, #tpu.memory_space<vmem>>, %arg7: memref<1x128xf32, #tpu.memory_space<vmem>>, %arg8: memref<128x128xbf16, #tpu.memory_space<vmem>>, %arg9: memref<1x128xf32, #tpu.memory_space<vmem>>, %arg10: memref<16x128xf32, #tpu.memory_space<vmem>>, %arg11: memref<16x128xf32, #tpu.memory_space<vmem>>) attributes {dimension_semantics = [#tpu.dimension_semantics<parallel>], iteration_bounds = array<i64: 1>, scalar_prefetch = 0 : i64, scratch_operands = 0 : i64, tpu.core_type = #tpu.core_type<tc>, window_params = [{transform_indices = @transform_0, window_bounds = array<i64: 16, 1024>}, {pipeline_mode = #tpu.pipeline_mode<synchronous>, transform_indices = @transform_1, window_bounds = array<i64: 1024, 128>}, {pipeline_mode = #tpu.pipeline_mode<synchronous>, transform_indices = @transform_2, window_bounds = array<i64: 1, 128>}, {pipeline_mode = #tpu.pipeline_mode<synchronous>, transform_indices = @transform_3, window_bounds = array<i64: 128, 128>}, {pipeline_mode = #tpu.pipeline_mode<synchronous>, transform_indices = @transform_4, window_bounds = array<i64: 1, 128>}, {pipeline_mode = #tpu.pipeline_mode<synchronous>, transform_indices = @transform_5, window_bounds = array<i64: 128, 128>}, {pipeline_mode = #tpu.pipeline_mode<synchronous>, transform_indices = @transform_6, window_bounds = array<i64: 1, 128>}, {pipeline_mode = #tpu.pipeline_mode<synchronous>, transform_indices = @transform_7, window_bounds = array<i64: 128, 128>}, {pipeline_mode = #tpu.pipeline_mode<synchronous>, transform_indices = @transform_8, window_bounds = array<i64: 1, 128>}, {transform_indices = @transform_9, window_bounds = array<i64: 16, 128>}, {transform_indices = @transform_10, window_bounds = array<i64: 16, 128>}]} {
    %c0 = arith.constant 0 : index
    %c0_0 = arith.constant 0 : index
    %0 = vector.load %arg1[%c0, %c0_0] : memref<16x1024xf32, #tpu.memory_space<vmem>>, vector<16x1024xf32>
    %1 = arith.truncf %0 : vector<16x1024xf32> to vector<16x1024xbf16>
    %c0_1 = arith.constant 0 : index
    %c0_2 = arith.constant 0 : index
    %2 = vector.load %arg2[%c0_1, %c0_2] : memref<1024x128xbf16, #tpu.memory_space<vmem>>, vector<1024x128xbf16>
    %cst = arith.constant dense<0.000000e+00> : vector<16x128xf32>
    %3 = tpu.matmul %1, %2, %cst {dimension_numbers = #tpu.dot_dimension_numbers<[1], [0], [0], [1], [0, 0, 1, 1], [], []>} : vector<16x1024xbf16>, vector<1024x128xbf16>, vector<16x128xf32> -> vector<16x128xf32>
    %c0_3 = arith.constant 0 : index
    %c0_4 = arith.constant 0 : index
    %4 = vector.load %arg3[%c0_3, %c0_4] : memref<1x128xf32, #tpu.memory_space<vmem>>, vector<1x128xf32>
    %5 = vector.broadcast %4 : vector<1x128xf32> to vector<16x128xf32>
    %6 = arith.addf %3, %5 : vector<16x128xf32>
    %cst_5 = arith.constant 0.000000e+00 : f32
    %7 = vector.broadcast %cst_5 : f32 to vector<16x128xf32>
    %8 = arith.maximumf %6, %7 : vector<16x128xf32>
    %9 = arith.truncf %8 : vector<16x128xf32> to vector<16x128xbf16>
    %c0_6 = arith.constant 0 : index
    %c0_7 = arith.constant 0 : index
    %10 = vector.load %arg4[%c0_6, %c0_7] : memref<128x128xbf16, #tpu.memory_space<vmem>>, vector<128x128xbf16>
    %cst_8 = arith.constant dense<0.000000e+00> : vector<16x128xf32>
    %11 = tpu.matmul %9, %10, %cst_8 {dimension_numbers = #tpu.dot_dimension_numbers<[1], [0], [0], [1], [0, 0, 1, 1], [], []>} : vector<16x128xbf16>, vector<128x128xbf16>, vector<16x128xf32> -> vector<16x128xf32>
    %c0_9 = arith.constant 0 : index
    %c0_10 = arith.constant 0 : index
    %12 = vector.load %arg5[%c0_9, %c0_10] : memref<1x128xf32, #tpu.memory_space<vmem>>, vector<1x128xf32>
    %13 = vector.broadcast %12 : vector<1x128xf32> to vector<16x128xf32>
    %14 = arith.addf %11, %13 : vector<16x128xf32>
    %cst_11 = arith.constant 0.000000e+00 : f32
    %15 = vector.broadcast %cst_11 : f32 to vector<16x128xf32>
    %16 = arith.maximumf %14, %15 : vector<16x128xf32>
    %17 = arith.truncf %16 : vector<16x128xf32> to vector<16x128xbf16>
    %c0_12 = arith.constant 0 : index
    %c0_13 = arith.constant 0 : index
    %18 = vector.load %arg6[%c0_12, %c0_13] : memref<128x128xbf16, #tpu.memory_space<vmem>>, vector<128x128xbf16>
    %cst_14 = arith.constant dense<0.000000e+00> : vector<16x128xf32>
    %19 = tpu.matmul %17, %18, %cst_14 {dimension_numbers = #tpu.dot_dimension_numbers<[1], [0], [0], [1], [0, 0, 1, 1], [], []>} : vector<16x128xbf16>, vector<128x128xbf16>, vector<16x128xf32> -> vector<16x128xf32>
    %c0_15 = arith.constant 0 : index
    %c0_16 = arith.constant 0 : index
    %20 = vector.load %arg7[%c0_15, %c0_16] : memref<1x128xf32, #tpu.memory_space<vmem>>, vector<1x128xf32>
    %21 = vector.broadcast %20 : vector<1x128xf32> to vector<16x128xf32>
    %22 = arith.addf %19, %21 : vector<16x128xf32>
    %23 = arith.truncf %22 : vector<16x128xf32> to vector<16x128xbf16>
    %c0_17 = arith.constant 0 : index
    %c0_18 = arith.constant 0 : index
    %24 = vector.load %arg8[%c0_17, %c0_18] : memref<128x128xbf16, #tpu.memory_space<vmem>>, vector<128x128xbf16>
    %cst_19 = arith.constant dense<0.000000e+00> : vector<16x128xf32>
    %25 = tpu.matmul %23, %24, %cst_19 {dimension_numbers = #tpu.dot_dimension_numbers<[1], [0], [0], [1], [0, 0, 1, 1], [], []>} : vector<16x128xbf16>, vector<128x128xbf16>, vector<16x128xf32> -> vector<16x128xf32>
    %c0_20 = arith.constant 0 : index
    %c0_21 = arith.constant 0 : index
    %26 = vector.load %arg9[%c0_20, %c0_21] : memref<1x128xf32, #tpu.memory_space<vmem>>, vector<1x128xf32>
    %27 = vector.broadcast %26 : vector<1x128xf32> to vector<16x128xf32>
    %28 = arith.addf %25, %27 : vector<16x128xf32>
    %c0_22 = arith.constant 0 : index
    %c0_23 = arith.constant 0 : index
    %29 = vector.load %arg10[%c0_22, %c0_23] : memref<16x128xf32, #tpu.memory_space<vmem>>, vector<16x128xf32>
    tpu.vector_store %arg10[%c0_22, %c0_23], %28 {strides = array<i32>} : memref<16x128xf32, #tpu.memory_space<vmem>>, vector<16x128xf32>,
    %c0_24 = arith.constant 0 : index
    %c0_25 = arith.constant 0 : index
    %30 = vector.load %arg11[%c0_24, %c0_25] : memref<16x128xf32, #tpu.memory_space<vmem>>, vector<16x128xf32>
    tpu.vector_store %arg11[%c0_24, %c0_25], %22 {strides = array<i32>} : memref<16x128xf32, #tpu.memory_space<vmem>>, vector<16x128xf32>,
    return
  }
  func.func @transform_0(%arg0: i32) -> (i32, i32) {
    %c0_i32 = arith.constant 0 : i32
    %c0_i32_0 = arith.constant 0 : i32
    return %arg0, %c0_i32 : i32, i32
  }
  func.func @transform_1(%arg0: i32) -> (i32, i32) {
    %c0_i32 = arith.constant 0 : i32
    %c0_i32_0 = arith.constant 0 : i32
    %c0_i32_1 = arith.constant 0 : i32
    return %c0_i32, %c0_i32_0 : i32, i32
  }
  func.func @transform_2(%arg0: i32) -> (i32, i32) {
    %c0_i32 = arith.constant 0 : i32
    %c0_i32_0 = arith.constant 0 : i32
    %c0_i32_1 = arith.constant 0 : i32
    return %c0_i32, %c0_i32_0 : i32, i32
  }
  func.func @transform_3(%arg0: i32) -> (i32, i32) {
    %c0_i32 = arith.constant 0 : i32
    %c0_i32_0 = arith.constant 0 : i32
    %c0_i32_1 = arith.constant 0 : i32
    return %c0_i32, %c0_i32_0 : i32, i32
  }
  func.func @transform_4(%arg0: i32) -> (i32, i32) {
    %c0_i32 = arith.constant 0 : i32
    %c0_i32_0 = arith.constant 0 : i32
    %c0_i32_1 = arith.constant 0 : i32
    return %c0_i32, %c0_i32_0 : i32, i32
  }
  func.func @transform_5(%arg0: i32) -> (i32, i32) {
    %c0_i32 = arith.constant 0 : i32
    %c0_i32_0 = arith.constant 0 : i32
    %c0_i32_1 = arith.constant 0 : i32
    return %c0_i32, %c0_i32_0 : i32, i32
  }
  func.func @transform_6(%arg0: i32) -> (i32, i32) {
    %c0_i32 = arith.constant 0 : i32
    %c0_i32_0 = arith.constant 0 : i32
    %c0_i32_1 = arith.constant 0 : i32
    return %c0_i32, %c0_i32_0 : i32, i32
  }
  func.func @transform_7(%arg0: i32) -> (i32, i32) {
    %c0_i32 = arith.constant 0 : i32
    %c0_i32_0 = arith.constant 0 : i32
    %c0_i32_1 = arith.constant 0 : i32
    return %c0_i32, %c0_i32_0 : i32, i32
  }
  func.func @transform_8(%arg0: i32) -> (i32, i32) {
    %c0_i32 = arith.constant 0 : i32
    %c0_i32_0 = arith.constant 0 : i32
    %c0_i32_1 = arith.constant 0 : i32
    return %c0_i32, %c0_i32_0 : i32, i32
  }
  func.func @transform_9(%arg0: i32) -> (i32, i32) {
    %c0_i32 = arith.constant 0 : i32
    %c0_i32_0 = arith.constant 0 : i32
    return %arg0, %c0_i32 : i32, i32
  }
  func.func @transform_10(%arg0: i32) -> (i32, i32) {
    %c0_i32 = arith.constant 0 : i32
    %c0_i32_0 = arith.constant 0 : i32
    return %arg0, %c0_i32 : i32, i32
  }
}

</mosaic_0001>

<bundles_post_ra>
// kernel: tpu_custom_call.1
= control target key start
LH: loop header
LB: loop body
LE: loop exit
PB: predicated region body
PF: predicated region fallthrough
CT: control target
= control target key end

     0   :  { %16 = vsyncpa [#allocation3], 0  ;;  %s1796_s0 = inlined_call_operand.hbm [shape: f32[16,1024], index: 0, kind: input, shape index: {}]   ;;  %s1797_s1 = inlined_call_operand.hbm [shape: bf16[1024,128], index: 1, kind: input, shape index: {}]   ;;  %s1798_s2 = inlined_call_operand.vmem [shape: f32[1,128], index: 2, kind: input, shape index: {}]   ;;  %s1799_s3 = inlined_call_operand.hbm [shape: bf16[128,128], index: 3, kind: input, shape index: {}]   ;;  %s1800_s4 = inlined_call_operand.vmem [shape: f32[1,128], index: 4, kind: input, shape index: {}]   ;;  %s1801_s5 = inlined_call_operand.hbm [shape: bf16[128,128], index: 5, kind: input, shape index: {}]   ;;  %s1802_s6 = inlined_call_operand.vmem [shape: f32[1,128], index: 6, kind: input, shape index: {}]   ;;  %s1803_s7 = inlined_call_operand.hbm [shape: bf16[128,128], index: 7, kind: input, shape index: {}]   ;;  %s1804_s8 = inlined_call_operand.vmem [shape: f32[1,128], index: 8, kind: input, shape index: {}]   ;;  %s1805_s9 = inlined_call_operand.hbm [shape: f32[16,128], index: 9, kind: output, shape index: {0}]   ;;  %s1806_s10 = inlined_call_operand.hbm [shape: f32[16,128], index: 10, kind: output, shape index: {1}]  }
   0x1   :  { %17 = vsyncpa [#allocation6], 0 }
   0x2   :  { %18 = vsyncpa [#allocation9], 0 }
   0x3   :  { %19 = vsyncpa [#allocation4], 0  ;;  %s38_s15 = sshll.u32 %s1797_s1, 4  ;;  %s39_s15 = int_to_ptr.hbm [resolvable:$true] %s38_s15 }
   0x4   :  { %20 = vsyncpa [#allocation13], 0  ;;  %s1696_s16 = smov [#allocation5]   ;;  %s68_s20 = sshll.u32 %s1801_s5, 4  ;;  %s69_s20 = int_to_ptr.hbm [resolvable:$true] %s68_s20 }
   0x5   :  { %s40_s17 = sshll.u32 %s1696_s16, 4  ;;  %s1697_s21 = smov 64   ;;  %s41_s17 = int_to_ptr.vmem [resolvable:$true] %s40_s17 }
   0x6   :  { %s1698_s22 = smov 4   ;;  %s1699_s23 = smov [#allocation8]  }
   0x7   :  { %46 = dma.hbm_to_vmem [thread:$0]  %s39_s15, 8192, %s41_s17, [#allocation6], %s1697_s21, %s1697_s21, %s1698_s22  }
   0x8   :  { %s70_s24 = sshll.u32 %s1699_s23, 4  ;;  %s25_s27 = sshll.u32 %s1796_s0, 4  ;;  %s71_s24 = int_to_ptr.vmem [resolvable:$true] %s70_s24  ;;  %s26_s27 = int_to_ptr.hbm [resolvable:$true] %s25_s27 }
   0x9   :  { %76 = dma.hbm_to_vmem [thread:$0]  %s69_s20, 1024, %s71_s24, [#allocation9], %s1697_s21, %s1697_s21, %s1698_s22  }
   0xa   :  { %s1700_s1 = smov [#allocation2]   ;;  %s53_s11 = sshll.u32 %s1799_s3, 4  ;;  %s54_s11 = int_to_ptr.hbm [resolvable:$true] %s53_s11 }
   0xb   :  { %s27_s28 = sshll.u32 %s1700_s1, 4  ;;  %s1701_s5 = smov 1024   ;;  %s28_s28 = int_to_ptr.vmem [resolvable:$true] %s27_s28 }
   0xc   :  { %33 = dma.hbm_to_vmem [thread:$0]  %s26_s27, 2048, %s28_s28, [#allocation3], %s1701_s5, %s1701_s5, %s1697_s21  }
   0xd   :  { %s83_s14 = sshll.u32 %s1803_s7, 4  ;;  %s1702_s15 = smov [#allocation7]   ;;  %s84_s14 = int_to_ptr.hbm [resolvable:$true] %s83_s14 }
   0xe   :  { %s55_s16 = sshll.u32 %s1702_s15, 4  ;;  %s1703_s0 = smov [#allocation10]   ;;  %s56_s16 = int_to_ptr.vmem [resolvable:$true] %s55_s16 }
   0xf   :  { %61 = dma.hbm_to_vmem [thread:$0]  %s54_s11, 1024, %s56_s16, [#allocation6], %s1697_s21, %s1697_s21, %s1698_s22  }
  0x10   :  { %s85_s17 = sshll.u32 %s1703_s0, 4  ;;  %s86_s17 = int_to_ptr.vmem [resolvable:$true] %s85_s17 }
  0x11   :  { %91 = dma.hbm_to_vmem [thread:$0]  %s84_s14, 1024, %s86_s17, [#allocation9], %s1697_s21, %s1697_s21, %s1698_s22  }
  0x12   :  { %1686 = dma.done.wait [#allocation3], 2048  }
  0x13   :  { %1687 = vsyncadd [#allocation3], 4294965248 }
  0x14   :  { %1688 = dma.done.wait [#allocation6], 9216  }
  0x15   :  { %1689 = vsyncadd [#allocation6], 4294958080 }
  0x16   :  { %1690 = dma.done.wait [#allocation9], 2048  }
  0x17   :  { %1691 = vsyncadd [#allocation9], 4294965248  ;;  %v1421_v0 = vld [vmem:[#allocation5 + $0x38] sm:$0xff]  ;;  %v1420_v4 = vld [vmem:[#allocation5 + $0x30] sm:$0xff]  ;;  %s1042_s24 = sshll.u32 %s1806_s10, 4  ;;  %s1705_s25 = smov 128   ;;  %s1043_s24 = int_to_ptr.hbm [resolvable:$true] %s1042_s24 }
  0x18   :  { %v1429_v1 = vld [vmem:[#allocation5 + $0x78] sm:$0xff]  ;;  %654 = vmatpush.bf16.msra.mxu0 %v1421_v0  ;;  %v1428_v5 = vld [vmem:[#allocation5 + $0x70] sm:$0xff]  ;;  %v1419_v8 = vld [vmem:[#allocation5 + $0x28] sm:$0xff]  ;;  %s1706_s26 = smov 8   ;;  %s1707_s1 = smov [#allocation11]  }
  0x19   :  { %v1437_v2 = vld [vmem:[#allocation5 + $0xb8] sm:$0xff]  ;;  %668 = vmatpush.bf16.msra.mxu1 %v1429_v1  ;;  %v1436_v6 = vld [vmem:[#allocation5 + $0xb0] sm:$0xff]  ;;  %v1427_v9 = vld [vmem:[#allocation5 + $0x68] sm:$0xff]  ;;  %s1027_s28 = sshll.u32 %s1707_s1, 4  ;;  %s1029_s11 = sshll.u32 %s1805_s9, 4  ;;  %s1028_s28 = int_to_ptr.vmem [resolvable:$true] %s1027_s28  ;;  %s1030_s11 = int_to_ptr.hbm [resolvable:$true] %s1029_s11 }
  0x1a   :  { %v1445_v3 = vld [vmem:[#allocation5 + $0xf8] sm:$0xff]  ;;  %682 = vmatpush.bf16.msra.mxu2 %v1437_v2  ;;  %v1444_v7 = vld [vmem:[#allocation5 + $0xf0] sm:$0xff]  ;;  %v1435_v10 = vld [vmem:[#allocation5 + $0xa8] sm:$0xff] }
  0x1b   :  { %696 = vmatpush.bf16.msra.mxu3 %v1445_v3  ;;  %v1443_v11 = vld [vmem:[#allocation5 + $0xe8] sm:$0xff]  ;;  %v1418_v12 = vld [vmem:[#allocation5 + $0x20] sm:$0xff]  ;;  %v1417_v16 = vld [vmem:[#allocation5 + $0x18] sm:$0xff] }
  0x1c   :  { %655 = vmatpush.bf16.msra.mxu0 %v1420_v4  ;;  %v1426_v13 = vld [vmem:[#allocation5 + $0x60] sm:$0xff]  ;;  %v1425_v17 = vld [vmem:[#allocation5 + $0x58] sm:$0xff]  ;;  %v1416_v20 = vld [vmem:[#allocation5 + $0x10] sm:$0xff] }
  0x1d   :  { %669 = vmatpush.bf16.msra.mxu1 %v1428_v5  ;;  %v1434_v14 = vld [vmem:[#allocation5 + $0xa0] sm:$0xff]  ;;  %v1433_v18 = vld [vmem:[#allocation5 + $0x98] sm:$0xff]  ;;  %v1424_v21 = vld [vmem:[#allocation5 + $0x50] sm:$0xff] }
  0x1e   :  { %683 = vmatpush.bf16.msra.mxu2 %v1436_v6  ;;  %v1442_v15 = vld [vmem:[#allocation5 + $0xe0] sm:$0xff]  ;;  %v1441_v19 = vld [vmem:[#allocation5 + $0xd8] sm:$0xff]  ;;  %v1432_v22 = vld [vmem:[#allocation5 + $0x90] sm:$0xff] }
  0x1f   :  { %697 = vmatpush.bf16.msra.mxu3 %v1444_v7  ;;  %v1440_v23 = vld [vmem:[#allocation5 + $0xd0] sm:$0xff]  ;;  %v1415_v24 = vld [vmem:[#allocation5 + $0x8] sm:$0xff]  ;;  %v1414_v28 = vld [vmem:[#allocation5] sm:$0xff] }
  0x20   :  { %656 = vmatpush.bf16.msra.mxu0 %v1419_v8  ;;  %v1423_v25 = vld [vmem:[#allocation5 + $0x48] sm:$0xff]  ;;  %v1422_v29 = vld [vmem:[#allocation5 + $0x40] sm:$0xff]  ;;  %v1453_v32 = vld [vmem:[#allocation5 + $0x138] sm:$0xff] }
  0x21   :  { %670 = vmatpush.bf16.msra.mxu1 %v1427_v9  ;;  %v1431_v26 = vld [vmem:[#allocation5 + $0x88] sm:$0xff]  ;;  %v1430_v30 = vld [vmem:[#allocation5 + $0x80] sm:$0xff]  ;;  %v1461_v33 = vld [vmem:[#allocation5 + $0x178] sm:$0xff] }
  0x22   :  { %684 = vmatpush.bf16.msra.mxu2 %v1435_v10  ;;  %v1439_v27 = vld [vmem:[#allocation5 + $0xc8] sm:$0xff]  ;;  %v1438_v31 = vld [vmem:[#allocation5 + $0xc0] sm:$0xff]  ;;  %v116_v34 = vld [vmem:[#allocation2 + $0x10] sm:$0xff] }
  0x23   :  { %698 = vmatpush.bf16.msra.mxu3 %v1443_v11  ;;  %v124_v35 = vld [vmem:[#allocation2 + $0x50] sm:$0xff]  ;;  %v114_v36 = vld [vmem:[#allocation2] sm:$0xff]  ;;  %v117_v38 = vld [vmem:[#allocation2 + $0x18] sm:$0xff] }
  0x24   :  { %657 = vmatpush.bf16.msra.mxu0 %v1418_v12  ;;  %v122_v37 = vld [vmem:[#allocation2 + $0x40] sm:$0xff]  ;;  %v125_v39 = vld [vmem:[#allocation2 + $0x58] sm:$0xff]  ;;  %v115_v40 = vld [vmem:[#allocation2 + $0x8] sm:$0xff]  ;;  %v132_v44 = vpack.c.bf16 %v124_v35, %v116_v34 }
  0x25   :  { %671 = vmatpush.bf16.msra.mxu1 %v1426_v13  ;;  %v123_v41 = vld [vmem:[#allocation2 + $0x48] sm:$0xff]  ;;  %v1469_v42 = vld [vmem:[#allocation5 + $0x1b8] sm:$0xff]  ;;  %v130_v45 = vpack.c.bf16 %v122_v37, %v114_v36  ;;  %v133_v46 = vpack.c.bf16 %v125_v39, %v117_v38  ;;  %v1452_v48 = vld [vmem:[#allocation5 + $0x130] sm:$0xff] }
  0x26   :  { %685 = vmatpush.bf16.msra.mxu2 %v1434_v14  ;;  %v1477_v43 = vld [vmem:[#allocation5 + $0x1f8] sm:$0xff]  ;;  %v131_v47 = vpack.c.bf16 %v123_v41, %v115_v40  ;;  %v1460_v49 = vld [vmem:[#allocation5 + $0x170] sm:$0xff]  ;;  %v1451_v52 = vld [vmem:[#allocation5 + $0x128] sm:$0xff] }
  0x27   :  { %699 = vmatpush.bf16.msra.mxu3 %v1442_v15  ;;  %v1468_v50 = vld [vmem:[#allocation5 + $0x1b0] sm:$0xff]  ;;  %v1459_v53 = vld [vmem:[#allocation5 + $0x168] sm:$0xff]  ;;  %v1450_v56 = vld [vmem:[#allocation5 + $0x120] sm:$0xff] }
  0x28   :  { %658 = vmatpush.bf16.msra.mxu0 %v1417_v16  ;;  %v1476_v51 = vld [vmem:[#allocation5 + $0x1f0] sm:$0xff]  ;;  %v1467_v54 = vld [vmem:[#allocation5 + $0x1a8] sm:$0xff]  ;;  %v1458_v57 = vld [vmem:[#allocation5 + $0x160] sm:$0xff] }
  0x29   :  { %672 = vmatpush.bf16.msra.mxu1 %v1425_v17  ;;  %v1475_v55 = vld [vmem:[#allocation5 + $0x1e8] sm:$0xff]  ;;  %v1466_v58 = vld [vmem:[#allocation5 + $0x1a0] sm:$0xff]  ;;  %v1449_v60 = vld [vmem:[#allocation5 + $0x118] sm:$0xff] }
  0x2a   :  { %686 = vmatpush.bf16.msra.mxu2 %v1433_v18  ;;  %v1474_v59 = vld [vmem:[#allocation5 + $0x1e0] sm:$0xff]  ;;  %v1457_v61 = vld [vmem:[#allocation5 + $0x158] sm:$0xff]  ;;  %v1448_v0 = vld [vmem:[#allocation5 + $0x110] sm:$0xff] }
  0x2b   :  { %700 = vmatpush.bf16.msra.mxu3 %v1441_v19  ;;  %v1465_v62 = vld [vmem:[#allocation5 + $0x198] sm:$0xff]  ;;  %v1456_v1 = vld [vmem:[#allocation5 + $0x150] sm:$0xff]  ;;  %v1447_v4 = vld [vmem:[#allocation5 + $0x108] sm:$0xff] }
  0x2c   :  { %659 = vmatpush.bf16.msra.mxu0 %v1416_v20  ;;  %v1473_v63 = vld [vmem:[#allocation5 + $0x1d8] sm:$0xff]  ;;  %v1464_v2 = vld [vmem:[#allocation5 + $0x190] sm:$0xff]  ;;  %v1455_v5 = vld [vmem:[#allocation5 + $0x148] sm:$0xff] }
  0x2d   :  { %673 = vmatpush.bf16.msra.mxu1 %v1424_v21  ;;  %v1472_v3 = vld [vmem:[#allocation5 + $0x1d0] sm:$0xff]  ;;  %v1463_v6 = vld [vmem:[#allocation5 + $0x188] sm:$0xff]  ;;  %v1446_v8 = vld [vmem:[#allocation5 + $0x100] sm:$0xff] }
  0x2e   :  { %687 = vmatpush.bf16.msra.mxu2 %v1432_v22  ;;  %v1471_v7 = vld [vmem:[#allocation5 + $0x1c8] sm:$0xff]  ;;  %v1454_v9 = vld [vmem:[#allocation5 + $0x140] sm:$0xff]  ;;  %v120_v16 = vld [vmem:[#allocation2 + $0x30] sm:$0xff] }
  0x2f   :  { %701 = vmatpush.bf16.msra.mxu3 %v1440_v23  ;;  %v1462_v10 = vld [vmem:[#allocation5 + $0x180] sm:$0xff]  ;;  %v119_v14 = vld [vmem:[#allocation2 + $0x28] sm:$0xff]  ;;  %v128_v17 = vld [vmem:[#allocation2 + $0x70] sm:$0xff] }
  0x30   :  { %660 = vmatpush.bf16.msra.mxu0 %v1415_v24  ;;  %v1470_v11 = vld [vmem:[#allocation5 + $0x1c0] sm:$0xff]  ;;  %v127_v15 = vld [vmem:[#allocation2 + $0x68] sm:$0xff]  ;;  %v121_v18 = vld [vmem:[#allocation2 + $0x38] sm:$0xff]  ;;  %v136_v22 = vpack.c.bf16 %v128_v17, %v120_v16 }
  0x31   :  { %674 = vmatpush.bf16.msra.mxu1 %v1423_v25  ;;  %v118_v12 = vld [vmem:[#allocation2 + $0x20] sm:$0xff]  ;;  %v129_v19 = vld [vmem:[#allocation2 + $0x78] sm:$0xff]  ;;  %v135_v21 = vpack.c.bf16 %v127_v15, %v119_v14  ;;  %v1484_v25 = vld [vmem:[#allocation7 + $0x30] sm:$0xff] }
  0x32   :  { %688 = vmatpush.bf16.msra.mxu2 %v1431_v26  ;;  %v126_v13 = vld [vmem:[#allocation2 + $0x60] sm:$0xff]  ;;  %v137_v23 = vpack.c.bf16 %v129_v19, %v121_v18  ;;  %v1485_v24 = vld [vmem:[#allocation7 + $0x38] sm:$0xff]  ;;  %v1483_v26 = vld [vmem:[#allocation7 + $0x28] sm:$0xff] }
  0x33   :  { %702 = vmatpush.bf16.msra.mxu3 %v1439_v27  ;;  %v134_v20 = vpack.c.bf16 %v126_v13, %v118_v12  ;;  %v1482_v27 = vld [vmem:[#allocation7 + $0x20] sm:$0xff]  ;;  %v1493_v39 = vld [vmem:[#allocation8 + $0x38] sm:$0xff]  ;;  %v1492_v40 = vld [vmem:[#allocation8 + $0x30] sm:$0xff] }
  0x34   :  { %661 = vmatpush.bf16.msra.mxu0 %v1414_v28  ;;  %v1481_v28 = vld [vmem:[#allocation7 + $0x18] sm:$0xff]  ;;  %v1514_v34 = vld [vmem:[%s1798_s2] ss:$0 sm:$0xff]  ;;  %v1500_v13 = vld [vmem:[#allocation10 + $0x30] sm:$0xff] }
  0x35   :  { %675 = vmatpush.bf16.msra.mxu1 %v1422_v29  ;;  %v1480_v29 = vld [vmem:[#allocation7 + $0x10] sm:$0xff]  ;;  %v1501_v12 = vld [vmem:[#allocation10 + $0x38] sm:$0xff]  ;;  %v1499_v14 = vld [vmem:[#allocation10 + $0x28] sm:$0xff] }
  0x36   :  { %689 = vmatpush.bf16.msra.mxu2 %v1430_v30  ;;  %v1498_v15 = vld [vmem:[#allocation10 + $0x20] sm:$0xff]  ;;  %v1497_v16 = vld [vmem:[#allocation10 + $0x18] sm:$0xff] }
  0x37   :  { %703 = vmatpush.bf16.msra.mxu3 %v1438_v31  ;;  %662 = vmatmul.bf16.vlgmr.msra.gmra.mxu0 %v130_v45  ;;  %v1479_v31 = vld [vmem:[#allocation7 + $0x8] sm:$0xff]  ;;  %v1515_v18 = vld [vmem:[%s1800_s4] ss:$0 sm:$0xff]  ;;  %s1704_s4 = smov [#allocation12]  }
  0x38   :  { %710 = vmatpush.bf16.msrb.mxu0 %v1453_v32  ;;  %676 = vmatmul.bf16.vlgmr.msra.gmra.mxu1 %v131_v47  ;;  %s1040_s21 = sshll.u32 %s1704_s4, 4  ;;  %s1041_s21 = int_to_ptr.vmem [resolvable:$true] %s1040_s21 }
  0x39   :  { %724 = vmatpush.bf16.msrb.mxu1 %v1461_v33  ;;  %690 = vmatmul.bf16.vlgmr.msra.gmra.mxu2 %v132_v44  ;;  %v1478_v33 = vld [vmem:[#allocation7] sm:$0xff]  ;;  %v1491_v44 = vld [vmem:[#allocation8 + $0x28] sm:$0xff] }
  0x3a   :  { %738 = vmatpush.bf16.msrb.mxu2 %v1469_v42  ;;  %704 = vmatmul.bf16.vlgmr.msra.gmra.mxu3 %v133_v46 }
  0x3b   :  { %752 = vmatpush.bf16.msrb.mxu3 %v1477_v43 }
  0x3c   :  { %711 = vmatpush.bf16.msrb.mxu0 %v1452_v48 }
  0x3d   :  { %725 = vmatpush.bf16.msrb.mxu1 %v1460_v49 }
  0x3e   :  { %739 = vmatpush.bf16.msrb.mxu2 %v1468_v50  ;;  %v1490_v50 = vld [vmem:[#allocation8 + $0x20] sm:$0xff] }
  0x3f   :  { %753 = vmatpush.bf16.msrb.mxu3 %v1476_v51 }
  0x40   :  { %712 = vmatpush.bf16.msrb.mxu0 %v1451_v52 }
  0x41   :  { %726 = vmatpush.bf16.msrb.mxu1 %v1459_v53 }
  0x42   :  { %740 = vmatpush.bf16.msrb.mxu2 %v1467_v54 }
  0x43   :  { %754 = vmatpush.bf16.msrb.mxu3 %v1475_v55 }
  0x44   :  { %713 = vmatpush.bf16.msrb.mxu0 %v1450_v56 }
  0x45   :  { %727 = vmatpush.bf16.msrb.mxu1 %v1458_v57 }
  0x46   :  { %741 = vmatpush.bf16.msrb.mxu2 %v1466_v58 }
  0x47   :  { %755 = vmatpush.bf16.msrb.mxu3 %v1474_v59 }
  0x48   :  { %714 = vmatpush.bf16.msrb.mxu0 %v1449_v60 }
  0x49   :  { %728 = vmatpush.bf16.msrb.mxu1 %v1457_v61 }
  0x4a   :  { %742 = vmatpush.bf16.msrb.mxu2 %v1465_v62 }
  0x4b   :  { %756 = vmatpush.bf16.msrb.mxu3 %v1473_v63 }
  0x4c   :  { %715 = vmatpush.bf16.msrb.mxu0 %v1448_v0 }
  0x4d   :  { %729 = vmatpush.bf16.msrb.mxu1 %v1456_v1 }
  0x4e   :  { %743 = vmatpush.bf16.msrb.mxu2 %v1464_v2 }
  0x4f   :  { %757 = vmatpush.bf16.msrb.mxu3 %v1472_v3 }
  0x50   :  { %716 = vmatpush.bf16.msrb.mxu0 %v1447_v4 }
  0x51   :  { %730 = vmatpush.bf16.msrb.mxu1 %v1455_v5 }
  0x52   :  { %744 = vmatpush.bf16.msrb.mxu2 %v1463_v6 }
  0x53   :  { %758 = vmatpush.bf16.msrb.mxu3 %v1471_v7 }
  0x54   :  { %717 = vmatpush.bf16.msrb.mxu0 %v1446_v8  ;;  %v1489_v8 = vld [vmem:[#allocation8 + $0x18] sm:$0xff] }
  0x55   :  { %731 = vmatpush.bf16.msrb.mxu1 %v1454_v9  ;;  %v1488_v9 = vld [vmem:[#allocation8 + $0x10] sm:$0xff] }
  0x56   :  { %745 = vmatpush.bf16.msrb.mxu2 %v1462_v10  ;;  %v1487_v10 = vld [vmem:[#allocation8 + $0x8] sm:$0xff] }
  0x57   :  { %759 = vmatpush.bf16.msrb.mxu3 %v1470_v11  ;;  %718 = vmatmul.bf16.vlgmr.msrb.gmra.mxu0 %v134_v20  ;;  %v1486_v11 = vld [vmem:[#allocation8] sm:$0xff] }
  0x58   :  { %732 = vmatmul.bf16.vlgmr.msrb.gmra.mxu1 %v135_v21  ;;  %837 = vmatpush.bf16.msra.mxu0 %v1485_v24 }
  0x59   :  { %746 = vmatmul.bf16.vlgmr.msrb.gmra.mxu2 %v136_v22  ;;  %922 = vmatpush.bf16.msra.mxu1 %v1493_v39 }
  0x5a   :  { %760 = vmatmul.bf16.vlgmr.msrb.gmra.mxu3 %v137_v23  ;;  %1005 = vmatpush.bf16.msra.mxu2 %v1501_v12 }
  0x5c   :  { %838 = vmatpush.bf16.msra.mxu0 %v1484_v25  ;;  %v1496_v25 = vld [vmem:[#allocation10 + $0x10] sm:$0xff] }
  0x5d   :  { %923 = vmatpush.bf16.msra.mxu1 %v1492_v40 }
  0x5e   :  { %1006 = vmatpush.bf16.msra.mxu2 %v1500_v13 }
  0x60   :  { %839 = vmatpush.bf16.msra.mxu0 %v1483_v26  ;;  %v1495_v26 = vld [vmem:[#allocation10 + $0x8] sm:$0xff] }
  0x61   :  { %924 = vmatpush.bf16.msra.mxu1 %v1491_v44 }
  0x62   :  { %1007 = vmatpush.bf16.msra.mxu2 %v1499_v14 }
  0x64   :  { %840 = vmatpush.bf16.msra.mxu0 %v1482_v27  ;;  %v1494_v27 = vld [vmem:[#allocation10] sm:$0xff] }
  0x65   :  { %925 = vmatpush.bf16.msra.mxu1 %v1490_v50 }
  0x66   :  { %1008 = vmatpush.bf16.msra.mxu2 %v1498_v15 }
  0x68   :  { %841 = vmatpush.bf16.msra.mxu0 %v1481_v28  ;;  %v1516_v28 = vld [vmem:[%s1802_s6] ss:$0 sm:$0xff] }
  0x69   :  { %926 = vmatpush.bf16.msra.mxu1 %v1489_v8 }
  0x6a   :  { %1009 = vmatpush.bf16.msra.mxu2 %v1497_v16 }
  0x6c   :  { %842 = vmatpush.bf16.msra.mxu0 %v1480_v29 }
  0x6d   :  { %927 = vmatpush.bf16.msra.mxu1 %v1488_v9 }
  0x6e   :  { %1010 = vmatpush.bf16.msra.mxu2 %v1496_v25 }
  0x70   :  { %843 = vmatpush.bf16.msra.mxu0 %v1479_v31 }
  0x71   :  { %928 = vmatpush.bf16.msra.mxu1 %v1487_v10 }
  0x72   :  { %1011 = vmatpush.bf16.msra.mxu2 %v1495_v26 }
  0x74   :  { %844 = vmatpush.bf16.msra.mxu0 %v1478_v33 }
  0x75   :  { %929 = vmatpush.bf16.msra.mxu1 %v1486_v11 }
  0x76   :  { %1012 = vmatpush.bf16.msra.mxu2 %v1494_v27 }
  0xb4   :  { %v663_v30 = vpop.f32.mrf.mxu0 }
  0xb5   :  { %v677_v32 = vpop.f32.mrf.mxu1  ;;  %v664_v37 = vadd.f32 %v1514_v34, %v663_v30 }
  0xb7   :  { %v678_v42 = vadd.f32 %v677_v32, %v664_v37 }
  0xbc   :  { %v691_v35 = vpop.f32.mrf.mxu2  ;;  %v665_v38 = vpop.f32.mrf.mxu0 }
  0xbd   :  { %v705_v36 = vpop.f32.mrf.mxu3  ;;  %v679_v41 = vpop.f32.mrf.mxu1  ;;  %v666_v43 = vadd.f32 %v1514_v34, %v665_v38  ;;  %v692_v47 = vadd.f32 %v691_v35, %v678_v42  ;;  %v1517_v34 = vld [vmem:[%s1804_s8] ss:$0 sm:$0xff] }
  0xbf   :  { %v680_v48 = vadd.f32 %v679_v41, %v666_v43  ;;  %v706_v52 = vadd.f32 %v705_v36, %v692_v47 }
  0xc4   :  { %v693_v45 = vpop.f32.mrf.mxu2 }
  0xc5   :  { %v707_v46 = vpop.f32.mrf.mxu3  ;;  %v694_v53 = vadd.f32 %v693_v45, %v680_v48 }
  0xc7   :  { %v708_v57 = vadd.f32 %v707_v46, %v694_v53 }
  0xd4   :  { %v719_v49 = vpop.f32.mrf.mxu0 }
  0xd5   :  { %v733_v51 = vpop.f32.mrf.mxu1  ;;  %v720_v54 = vadd.f32 %v719_v49, %v706_v52 }
  0xd7   :  { %v734_v59 = vadd.f32 %v733_v51, %v720_v54 }
  0xdc   :  { %v747_v55 = vpop.f32.mrf.mxu2  ;;  %v721_v58 = vpop.f32.mrf.mxu0 }
  0xdd   :  { %v761_v56 = vpop.f32.mrf.mxu3  ;;  %v722_v60 = vadd.f32 %v721_v58, %v708_v57  ;;  %v748_v61 = vadd.f32 %v747_v55, %v734_v59  ;;  %v735_v62 = vpop.f32.mrf.mxu1 }
  0xdf   :  { %v736_v63 = vadd.f32 %v735_v62, %v722_v60  ;;  %v762_v1 = vadd.f32 %v761_v56, %v748_v61 }
  0xe1   :  { %v766_v5 = vmax.f32 %v762_v1, 0.0 }
  0xe4   :  { %v749_v0 = vpop.f32.mrf.mxu2 }
  0xe5   :  { %v750_v2 = vadd.f32 %v749_v0, %v736_v63  ;;  %v763_v3 = vpop.f32.mrf.mxu3 }
  0xe7   :  { %v764_v4 = vadd.f32 %v763_v3, %v750_v2 }
  0xe9   :  { %v767_v6 = vmax.f32 %v764_v4, 0.0 }
  0xeb   :  { %v768_v7 = vpack.c.bf16 %v767_v6, %v766_v5 }
  0xed   :  { %845 = vmatmul.bf16.vlgmr.msra.gmra.mxu0 %v768_v7 }
 0x16a   :  { %v846_v17 = vpop.f32.mrf.mxu0 }
 0x16b   :  { %v847_v19 = vadd.f32 %v1515_v18, %v846_v17 }
 0x16d   :  { %v851_v22 = vmax.f32 %v847_v19, 0.0 }
 0x172   :  { %v848_v20 = vpop.f32.mrf.mxu0 }
 0x173   :  { %v849_v21 = vadd.f32 %v1515_v18, %v848_v20 }
 0x175   :  { %v852_v23 = vmax.f32 %v849_v21, 0.0 }
 0x177   :  { %v853_v24 = vpack.c.bf16 %v852_v23, %v851_v22 }
 0x179   :  { %930 = vmatmul.bf16.vlgmr.msra.gmra.mxu1 %v853_v24 }
 0x1f6   :  { %v931_v29 = vpop.f32.mrf.mxu1 }
 0x1f7   :  { %v932_v30 = vadd.f32 %v1516_v28, %v931_v29 }
 0x1f9   :  { %1021 = vst [vmem:[#allocation12] sm:$0xff] %v932_v30 }
 0x1fe   :  { %v933_v31 = vpop.f32.mrf.mxu1 }
 0x1ff   :  { %v934_v32 = vadd.f32 %v1516_v28, %v933_v31 }
 0x201   :  { %v936_v33 = vpack.c.bf16 %v934_v32, %v932_v30  ;;  %1022 = vst [vmem:[#allocation12 + $0x8] sm:$0xff] %v934_v32 }
 0x202   :  { %1048 = dma.vmem_to_hbm [thread:$0]  %s1041_s21, 256, %s1043_s24, [#allocation13], %s1705_s25, %s1705_s25, %s1706_s26  }
 0x203   :  { %1013 = vmatmul.bf16.vlgmr.msra.gmra.mxu2 %v936_v33 }
 0x286   :  { %v1014_v35 = vpop.f32.mrf.mxu2 }
 0x287   :  { %v1015_v36 = vadd.f32 %v1517_v34, %v1014_v35 }
 0x289   :  { %1019 = vst [vmem:[#allocation11] sm:$0xff] %v1015_v36 }
 0x28e   :  { %v1016_v37 = vpop.f32.mrf.mxu2 }
 0x28f   :  { %v1017_v38 = vadd.f32 %v1517_v34, %v1016_v37 }
 0x291   :  { %1020 = vst [vmem:[#allocation11 + $0x8] sm:$0xff] %v1017_v38 }
 0x292   :  { %1035 = dma.vmem_to_hbm [thread:$0]  %s1028_s28, 256, %s1030_s11, [#allocation4], %s1705_s25, %s1705_s25, %s1706_s26  }
 0x293   :  { %1692 = dma.done.wait [#allocation4], 256  }
 0x294   :  { %1693 = vsyncadd [#allocation4], 4294967040 }
 0x295   :  { %1694 = dma.done.wait [#allocation13], 256  }
 0x296   :  { %1695 = vsyncadd [#allocation13], 4294967040 }
 0x297   :  { %1057 = vsyncpa [#allocation3], 1 }
 0x298   :  { %1058 = vsyncpa [#allocation6], 1 }
 0x299   :  { %1059 = vsyncpa [#allocation9], 1 }
 0x29a   :  { %1060 = vsyncpa [#allocation4], 1 }
 0x29b   :  { %1061 = vsyncpa [#allocation13], 1 }

</bundles_post_ra>
